<compile_context>
chip_gen: v5e
topology: v5e:2x2
jax: 0.10.0
libtpu: 0.0.40
codegen_flags: <defaults>
</compile_context>

<pallas_src>
import functools

import jax
import jax.numpy as jnp
import numpy as np
from jax import lax
from jax.experimental import pallas as pl
from jax.experimental.pallas import tpu as pltpu


def _round_up(x: int, m: int) -> int:
    return ((x + m - 1) // m) * m


def _row_align(dtype) -> int:
    # Native second-minor tile: 8 sublanes for 4-byte, 16 for 2-byte, 32 for 1-byte.
    return max(8, 32 // jnp.dtype(dtype).itemsize)


def _l2var_kernel(x_ref, t_ref, out_ref, *, use_sqrt, chunk, total_rows, ragged):
    """One batch tile: per-lane partial sums of the (un-weighted) squared diff.

    x_ref, t_ref : (block_rows, 128) VMEM tiles of lane-dense inputs/targets
                   in their native dtype.
    out_ref      : (8, 128) f32 per-grid-step partial sums (weights applied in
                   the wrapper).
    """
    f32 = jnp.float32
    block_rows = x_ref.shape[0]
    n_chunks = block_rows // chunk
    base_row = pl.program_id(0) * block_rows

    if ragged:
        # Hoisted out of the loop (JAX does not CSE broadcast_in_dim).
        row_iota = lax.broadcasted_iota(jnp.int32, (chunk, 128), 0)

    def body(g, acc):
        start = pl.multiple_of(g * chunk, chunk)
        x = x_ref[pl.ds(start, chunk), :].astype(f32)
        t = t_ref[pl.ds(start, chunk), :].astype(f32)
        if ragged:
            # Rows past `total_rows` only exist in the (partial) last block and
            # hold stale VMEM — zero them before any arithmetic (NaN-safe).
            valid = (base_row + g * chunk + row_iota) < total_rows
            x = jnp.where(valid, x, 0.0)
            t = jnp.where(valid, t, 0.0)
        if use_sqrt:
            d = jnp.sqrt(x) - jnp.sqrt(t)
        else:
            d = x - t
        sq = d * d
        if chunk > 8:
            sq = sq.reshape(chunk // 8, 8, 128).sum(axis=0)
        return acc + sq

    out_ref[...] = lax.fori_loop(
        0, n_chunks, body, jnp.zeros((8, 128), f32), unroll=min(8, n_chunks))


def l2var_loss(inputs, targets, two_l_plus_1, *, use_sqrt=True, block_rows=4096):
    """Pallas L2VarLoss. inputs/targets: (B, L); two_l_plus_1: (L,)."""
    B, L = inputs.shape
    assert targets.shape == (B, L)
    assert two_l_plus_1.shape == (L,)
    # TODO(synk): lane-dense repack assumes l_max + 1 <= 128; larger spectra
    #             would need a multi-row weight period.
    assert L <= 128

    f32 = jnp.float32

    # Lane-dense packing: each 128-lane row holds samples_per_row samples of
    # L_pad coefficients (padded lanes get weight 0, so they never contribute).
    L_pad = max(1, pl.next_power_of_2(L))
    samples_per_row = 128 // L_pad
    w_pad = jnp.zeros((L_pad,), f32).at[:L].set(two_l_plus_1.astype(f32))
    w_row = jnp.tile(w_pad, samples_per_row)  # (128,) periodic per-lane weight

    # Minimal padding: only enough samples so B * L_pad is a multiple of 128.
    # When L is already a power of two and B % samples_per_row == 0 this is a
    # pure reshape — zero extra HBM traffic, native dtype preserved.
    B_pad = _round_up(B, samples_per_row)
    rows = B_pad // samples_per_row

    def repack(a):
        if B_pad != B or L_pad != L:
            # Zero padding is safe: x = t = 0 contributes exactly 0 to the sum.
            a = jnp.pad(a, ((0, B_pad - B), (0, L_pad - L)))
        return a.reshape(rows, 128)

    x = repack(inputs)
    t = repack(targets)

    # Tile-size selection: multiple of the coarsest sublane packing among the
    # (possibly sub-32-bit) input dtypes, capped so that (a) we never allocate
    # far beyond the real row count and (b) there are >= 2 grid blocks whenever
    # possible so v7x can shard the parallel axis across both TensorCores.
    align = max(_row_align(x.dtype), _row_align(t.dtype))
    blk = max(align, min(block_rows, _round_up(rows, align)))
    if rows > align:
        blk = min(blk, _round_up(pl.cdiv(rows, 2), align))
    blk = _round_up(blk, align)
    num_blocks = pl.cdiv(rows, blk)
    ragged = (rows % blk) != 0  # static: last block partial -> mask in kernel

    kernel = functools.partial(
        _l2var_kernel, use_sqrt=use_sqrt, chunk=align, total_rows=rows,
        ragged=ragged)

    elems = rows * 128
    in_bytes = elems * (jnp.dtype(x.dtype).itemsize + jnp.dtype(t.dtype).itemsize)
    partials = pl.pallas_call(
        kernel,
        out_shape=jax.ShapeDtypeStruct((num_blocks * 8, 128), f32),
        grid_spec=pltpu.PrefetchScalarGridSpec(
            num_scalar_prefetch=0,
            grid=(num_blocks,),
            in_specs=[
                pl.BlockSpec((blk, 128), lambda i: (i, 0)),
                pl.BlockSpec((blk, 128), lambda i: (i, 0)),
            ],
            out_specs=pl.BlockSpec((8, 128), lambda i: (i, 0)),
        ),
        compiler_params=pltpu.CompilerParams(
            # Independent per-block partial sums -> both v7x TensorCores can run.
            dimension_semantics=("parallel",),
            # 2 operands x 2 pipeline buffers x <=2 MiB tiles + output << 32 MiB;
            # safe on v5e/v6e/v7x alike.
            vmem_limit_bytes=32 * 1024 * 1024,
        ),
        cost_estimate=pl.CostEstimate(
            flops=3 * elems,
            transcendentals=(2 * elems) if use_sqrt else 0,
            bytes_accessed=in_bytes + num_blocks * 8 * 128 * 4,
        ),
    )(x, t)

    # Apply the (2l+1)/(4*pi) weighting once, reduce, and take the batch mean.
    # TODO(synk): for extremely large B a pairwise/Kahan wrapper sum would
    #             reduce f32 accumulation error of the block partials.
    return jnp.sum(partials * w_row[None, :]) / jnp.float32(B)


def _reference_loss(inputs, targets, two_l_plus_1, use_sqrt):
    inputs = inputs.astype(jnp.float32)
    targets = targets.astype(jnp.float32)
    if use_sqrt:
        d = jnp.sqrt(inputs) - jnp.sqrt(targets)
    else:
        d = inputs - targets
    return jnp.mean((d * d) @ two_l_plus_1)


if __name__ == "__main__":
    # Module parameter setup (deterministic, from __init__): l_max -> weights.
    l_max = 15
    L = l_max + 1
    two_l_plus_1 = (
        (jnp.arange(L, dtype=jnp.float32) * 2.0 + 1.0) / (4.0 * np.pi)
    ).astype(jnp.float32)

    key = jax.random.PRNGKey(0)
    k1, k2, k3, k4, k5, k6 = jax.random.split(key, 6)

    # Case 1: small B, lane-packed into a single (partial) row (ragged path).
    B = 8
    inputs = jax.random.uniform(k1, (B, L), dtype=jnp.float32, minval=0.01, maxval=2.0)
    targets = jax.random.uniform(k2, (B, L), dtype=jnp.float32, minval=0.01, maxval=2.0)

    loss = jax.block_until_ready(l2var_loss(inputs, targets, two_l_plus_1, use_sqrt=True))
    ref = _reference_loss(inputs, targets, two_l_plus_1, use_sqrt=True)
    np.testing.assert_allclose(np.asarray(loss), np.asarray(ref), rtol=1e-5, atol=1e-5)

    loss_ns = jax.block_until_ready(l2var_loss(inputs, targets, two_l_plus_1, use_sqrt=False))
    ref_ns = _reference_loss(inputs, targets, two_l_plus_1, use_sqrt=False)
    np.testing.assert_allclose(np.asarray(loss_ns), np.asarray(ref_ns), rtol=1e-5, atol=1e-5)

    # Case 2: odd batch size (exercises the minimal-pad + in-kernel mask path).
    B2 = 13
    inputs2 = jax.random.uniform(k3, (B2, L), dtype=jnp.float32, minval=0.01, maxval=2.0)
    targets2 = jax.random.uniform(k4, (B2, L), dtype=jnp.float32, minval=0.01, maxval=2.0)
    loss2 = jax.block_until_ready(l2var_loss(inputs2, targets2, two_l_plus_1, use_sqrt=True))
    ref2 = _reference_loss(inputs2, targets2, two_l_plus_1, use_sqrt=True)
    np.testing.assert_allclose(np.asarray(loss2), np.asarray(ref2), rtol=1e-5, atol=1e-5)

    # Case 3: aligned batch (pure-reshape, copy-free path; no mask emitted).
    B3 = 64
    inputs3 = jax.random.uniform(k5, (B3, L), dtype=jnp.float32, minval=0.01, maxval=2.0)
    targets3 = jax.random.uniform(k6, (B3, L), dtype=jnp.float32, minval=0.01, maxval=2.0)
    loss3 = jax.block_until_ready(l2var_loss(inputs3, targets3, two_l_plus_1, use_sqrt=True))
    ref3 = _reference_loss(inputs3, targets3, two_l_plus_1, use_sqrt=True)
    np.testing.assert_allclose(np.asarray(loss3), np.asarray(ref3), rtol=1e-5, atol=1e-5)

    # Case 4: bf16 inputs streamed in native dtype, cast to f32 inside the kernel.
    inputs_bf = inputs3.astype(jnp.bfloat16)
    targets_bf = targets3.astype(jnp.bfloat16)
    loss4 = jax.block_until_ready(l2var_loss(inputs_bf, targets_bf, two_l_plus_1, use_sqrt=True))
    ref4 = _reference_loss(inputs_bf, targets_bf, two_l_plus_1, use_sqrt=True)
    np.testing.assert_allclose(np.asarray(loss4), np.asarray(ref4), rtol=1e-4, atol=1e-5)

    print("KERNEL_OK")
</pallas_src>

<mosaic_0001>
module attributes {stable_mosaic.version = 11 : i64} {
  func.func @_l2var_kernel(%arg0: i32, %arg1: memref<8x128xf32, #tpu.memory_space<vmem>>, %arg2: memref<8x128xf32, #tpu.memory_space<vmem>>, %arg3: memref<8x128xf32, #tpu.memory_space<vmem>>) attributes {dimension_semantics = [#tpu.dimension_semantics<parallel>], iteration_bounds = array<i64: 1>, scalar_prefetch = 0 : i64, scratch_operands = 0 : i64, tpu.core_type = #tpu.core_type<tc>, window_params = [{transform_indices = @transform_0, window_bounds = array<i64: 8, 128>}, {transform_indices = @transform_1, window_bounds = array<i64: 8, 128>}, {transform_indices = @transform_2, window_bounds = array<i64: 8, 128>}]} {
    %c8_i32 = arith.constant 8 : i32
    %0 = arith.muli %arg0, %c8_i32 : i32
    %1 = tpu.iota {dimensions = array<i32: 0>} : vector<8x128xi32>
    %cst = arith.constant 0.000000e+00 : f32
    %2 = vector.broadcast %cst : f32 to vector<8x128xf32>
    %c0_i32 = arith.constant 0 : i32
    %c8_i32_0 = arith.constant 8 : i32
    %3 = arith.muli %c0_i32, %c8_i32_0 : i32
    %4 = tpu.assume_multiple %3, 8 : i32
    %5 = arith.index_cast %4 : i32 to index
    %c0 = arith.constant 0 : index
    %6 = vector.load %arg1[%5, %c0] : memref<8x128xf32, #tpu.memory_space<vmem>>, vector<8x128xf32>
    %7 = arith.index_cast %4 : i32 to index
    %c0_1 = arith.constant 0 : index
    %8 = vector.load %arg2[%7, %c0_1] : memref<8x128xf32, #tpu.memory_space<vmem>>, vector<8x128xf32>
    %c8_i32_2 = arith.constant 8 : i32
    %9 = arith.muli %c0_i32, %c8_i32_2 : i32
    %10 = arith.addi %0, %9 : i32
    %11 = vector.broadcast %10 : i32 to vector<8x128xi32>
    %12 = arith.addi %11, %1 : vector<8x128xi32>
    %c1_i32 = arith.constant 1 : i32
    %13 = vector.broadcast %c1_i32 : i32 to vector<8x128xi32>
    %14 = arith.cmpi slt, %12, %13 : vector<8x128xi32>
    %cst_3 = arith.constant 0.000000e+00 : f32
    %15 = vector.broadcast %cst_3 : f32 to vector<8x128xf32>
    %16 = arith.select %14, %6, %15 : vector<8x128xi1>, vector<8x128xf32>
    %cst_4 = arith.constant 0.000000e+00 : f32
    %17 = vector.broadcast %cst_4 : f32 to vector<8x128xf32>
    %18 = arith.select %14, %8, %17 : vector<8x128xi1>, vector<8x128xf32>
    %19 = math.sqrt %16 : vector<8x128xf32>
    %20 = math.sqrt %18 : vector<8x128xf32>
    %21 = arith.subf %19, %20 : vector<8x128xf32>
    %22 = arith.mulf %21, %21 : vector<8x128xf32>
    %23 = arith.addf %2, %22 : vector<8x128xf32>
    %c1_i32_5 = arith.constant 1 : i32
    %c0_6 = arith.constant 0 : index
    %c0_7 = arith.constant 0 : index
    %24 = vector.load %arg3[%c0_6, %c0_7] : memref<8x128xf32, #tpu.memory_space<vmem>>, vector<8x128xf32>
    tpu.vector_store %arg3[%c0_6, %c0_7], %23 {strides = array<i32>} : memref<8x128xf32, #tpu.memory_space<vmem>>, vector<8x128xf32>,
    return
  }
  func.func @transform_0(%arg0: i32) -> (i32, i32) {
    %c0_i32 = arith.constant 0 : i32
    %c0_i32_0 = arith.constant 0 : i32
    return %arg0, %c0_i32 : i32, i32
  }
  func.func @transform_1(%arg0: i32) -> (i32, i32) {
    %c0_i32 = arith.constant 0 : i32
    %c0_i32_0 = arith.constant 0 : i32
    return %arg0, %c0_i32 : i32, i32
  }
  func.func @transform_2(%arg0: i32) -> (i32, i32) {
    %c0_i32 = arith.constant 0 : i32
    %c0_i32_0 = arith.constant 0 : i32
    return %arg0, %c0_i32 : i32, i32
  }
}

</mosaic_0001>

<bundles_post_ra>
// kernel: tpu_custom_call.1
= control target key start
LH: loop header
LB: loop body
LE: loop exit
PB: predicated region body
PF: predicated region fallthrough
CT: control target
= control target key end

     0   :  { %7 = vsyncpa [#allocation3], 0  ;;  %s216_s0 = inlined_call_operand.hbm [shape: f32[1,128], index: 0, kind: input, shape index: {}]   ;;  %s217_s1 = inlined_call_operand.hbm [shape: f32[1,128], index: 1, kind: input, shape index: {}]   ;;  %s218_s2 = inlined_call_operand.hbm [shape: f32[8,128], index: 2, kind: output, shape index: {}]  }
   0x1   :  { %8 = vsyncpa [#allocation6], 0 }
   0x2   :  { %9 = vsyncpa [#allocation4], 0 }
   0x3   :  { %13 = vsyncadd [#allocation3], 112  ;;  %s14_s11 = sshll.u32 %s216_s0, 4  ;;  %s187_s12 = smov [#allocation2]   ;;  %s15_s11 = int_to_ptr.hbm [resolvable:$true] %s14_s11 }
   0x4   :  { %s16_s13 = sshll.u32 %s187_s12, 4  ;;  %s188_s14 = smov 16   ;;  %s17_s13 = int_to_ptr.vmem [resolvable:$true] %s16_s13 }
   0x5   :  { %s189_s15 = smov 1  }
   0x6   :  { %22 = dma.hbm_to_vmem [thread:$0]  %s15_s11, 16, %s17_s13, [#allocation3], %s188_s14, %s188_s14, %s189_s15  }
   0x7   :  { %26 = vsyncadd [#allocation6], 112  ;;  %s27_s18 = sshll.u32 %s217_s1, 4  ;;  %s190_s19 = smov [#allocation5]   ;;  %s28_s18 = int_to_ptr.hbm [resolvable:$true] %s27_s18 }
   0x8   :  { %s29_s20 = sshll.u32 %s190_s19, 4  ;;  %s30_s20 = int_to_ptr.vmem [resolvable:$true] %s29_s20 }
   0x9   :  { %35 = dma.hbm_to_vmem [thread:$0]  %s28_s18, 16, %s30_s20, [#allocation6], %s188_s14, %s188_s14, %s189_s15  }
   0xa   :  { %181 = dma.done.wait [#allocation3], 128  }
   0xb   :  { %182 = vsyncadd [#allocation3], 4294967168 }
   0xc   :  { %183 = dma.done.wait [#allocation6], 128  }
   0xd   :  { %184 = vsyncadd [#allocation6], 4294967168  ;;  %v45_v0 = vlaneseq  ;;  %v47_v2 = vld [vmem:[#allocation2] sm:$0xff]  ;;  %v48_v3 = vld [vmem:[#allocation5] sm:$0xff]  ;;  %s191_s0 = smov [#allocation7]   ;;  %s89_s23 = sshll.u32 %s218_s2, 4  ;;  %s90_s23 = int_to_ptr.hbm [resolvable:$true] %s89_s23 }
   0xe   :  { %s87_s1 = sshll.u32 %s191_s0, 4  ;;  %s88_s1 = int_to_ptr.vmem [resolvable:$true] %s87_s1 }
   0xf   :  { %v46_v1 = vshrl.u32 %v45_v0, 7 }
  0x11   :  { %vm51_vm0 = vcmp.lt.s32.totalorder %v46_v1, 1 }
  0x12   :  { %v52_v4 = vsel %vm51_vm0, %v47_v2, 0.0  ;;  %v53_v5 = vsel %vm51_vm0, %v48_v3, 0.0 }
  0x13   :  { %105 = vrsqrt.f32 %v52_v4  ;;  %vm61_vm1 = vcmp.eq.f32.partialorder %v52_v4, inf  ;;  %v64_v17 = vand.u32 2147483648, %v52_v4  ;;  %vm63_vm2 = vcmp.eq.f32.partialorder %v52_v4, 0.0 }
  0x14   :  { %107 = vrsqrt.f32 %v53_v5  ;;  %vm73_vm3 = vcmp.eq.f32.partialorder %v53_v5, inf  ;;  %v76_v20 = vand.u32 2147483648, %v53_v5  ;;  %vm75_vm4 = vcmp.eq.f32.partialorder %v53_v5, 0.0 }
  0x19   :  { %v106_v6 = vpop.eup %105 }
  0x1a   :  { %v108_v7 = vpop.eup %107  ;;  %v55_v8 = vmul.f32 %v106_v6, %v52_v4 }
  0x1b   :  { %v67_v9 = vmul.f32 %v108_v7, %v53_v5 }
  0x1c   :  { %v56_v10 = vmul.f32 %v106_v6, %v55_v8 }
  0x1d   :  { %v68_v11 = vmul.f32 %v108_v7, %v67_v9 }
  0x1e   :  { %v57_v12 = vmul.f32 0.5, %v56_v10 }
  0x1f   :  { %v69_v13 = vmul.f32 0.5, %v68_v11 }
  0x20   :  { %v58_v14 = vsub.f32 1.5, %v57_v12 }
  0x21   :  { %v70_v15 = vsub.f32 1.5, %v69_v13 }
  0x22   :  { %v59_v16 = vmul.f32 %v106_v6, %v58_v14 }
  0x23   :  { %v71_v18 = vmul.f32 %v108_v7, %v70_v15 }
  0x24   :  { %v60_v19 = vmul.f32 %v59_v16, %v52_v4 }
  0x25   :  { %v72_v21 = vmul.f32 %v71_v18, %v53_v5 }
  0x26   :  { %v62_v22 = vsel %vm61_vm1, %v52_v4, %v60_v19 }
  0x27   :  { %v65_v23 = vsel %vm63_vm2, %v64_v17, %v62_v22  ;;  %v74_v24 = vsel %vm73_vm3, %v53_v5, %v72_v21 }
  0x28   :  { %v77_v25 = vsel %vm75_vm4, %v76_v20, %v74_v24 }
  0x29   :  { %v78_v26 = vsub.f32 %v65_v23, %v77_v25 }
  0x2b   :  { %v79_v27 = vmul.f32 %v78_v26, %v78_v26 }
  0x2d   :  { %81 = vst [vmem:[#allocation7] sm:$0xff] %v79_v27 }
  0x2e   :  { %92 = dma.vmem_to_hbm [thread:$0]  %s88_s1, 128, %s90_s23, [#allocation4]  }
  0x2f   :  { %185 = dma.done.wait [#allocation4], 128  }
  0x30   :  { %186 = vsyncadd [#allocation4], 4294967168 }
  0x31   :  { %97 = vsyncpa [#allocation3], 1 }
  0x32   :  { %98 = vsyncpa [#allocation6], 1 }
  0x33   :  { %99 = vsyncpa [#allocation4], 1 }

</bundles_post_ra>
